<compile_context>
chip_gen: v7x
topology: tpu7x:2x2x1
jax: 0.10.0
libtpu: 0.0.40
codegen_flags: <defaults>
</compile_context>

<pallas_src>
import functools

import jax
import jax.numpy as jnp
from jax import lax
from jax.experimental import pallas as pl
from jax.experimental.pallas import tpu as pltpu

EPS = 1e-5
LANE = 128


# ---------------------------------------------------------------------------
# helpers
# ---------------------------------------------------------------------------
def _vmem_limit_bytes():
    """Scoped-VMEM budget: ~half of physical (64 MiB on v5e/v6e, 32 MiB on v7x)."""
    try:
        cap = int(pltpu.get_tpu_info().vmem_capacity_bytes)
    except Exception:  # pragma: no cover - conservative fallback
        cap = 64 * 1024 * 1024
    return int(max(32 * 1024 * 1024, min(cap // 2, 96 * 1024 * 1024)))


def _pick_tile_h(H, W, bytes_per_row, halo_rows, budget_bytes):
    """Largest divisor of H whose (tile + halo) x-slab fits the per-block budget;
    prefers tiles whose flattened row count is sublane (8) aligned."""
    def fits(th):
        return (th + halo_rows) * bytes_per_row <= budget_bytes

    divisors = [th for th in range(H, 0, -1) if H % th == 0]
    for th in divisors:
        if fits(th) and (th * W) % 8 == 0:
            return th
    for th in divisors:
        if fits(th):
            return th
    return 1


# ---------------------------------------------------------------------------
# kernels
# ---------------------------------------------------------------------------
def _conv_tile(x_ref, w_ref, *, ky_taps, tile_m, w_cols):
    """Conv for one H-tile as `ky_taps` row-shifted MXU matmuls.

    x_ref: (1, 1, tile_m + halo*W, K)  tap-packed rows (K = 9*Cin or 3*Cin)
    w_ref: (ky_taps, K, Cpad)          per-ky weight slabs (Cout zero-padded)
    Returns (tile_m, Cpad) float32.
    """
    acc = None
    for ky in range(ky_taps):
        lhs = x_ref[0, 0, pl.ds(ky * w_cols, tile_m), :]
        part = jnp.dot(lhs, w_ref[ky], preferred_element_type=jnp.float32)
        acc = part if acc is None else acc + part
    return acc


def _stats_kernel(x_ref, w_ref, c_ref, sum_ref, sq_ref, *, ky_taps, tile_m, w_cols):
    """Pass 1: per-batch partial sum / sum-of-squares of the (shift-centered) conv."""
    i = pl.program_id(1)

    @pl.when(i == 0)
    def _init():
        sum_ref[...] = jnp.zeros_like(sum_ref)
        sq_ref[...] = jnp.zeros_like(sq_ref)

    acc = _conv_tile(x_ref, w_ref, ky_taps=ky_taps, tile_m=tile_m, w_cols=w_cols)
    centered = acc - c_ref[...]                       # per-channel shift -> stable var
    sum_ref[...] += jnp.sum(centered, axis=0, keepdims=True)[None]
    sq_ref[...] += jnp.sum(centered * centered, axis=0, keepdims=True)[None]


def _apply_kernel(x_ref, w_ref, scale_ref, shift_ref, o_ref, *,
                  ky_taps, tile_m, w_cols, cout):
    """Pass 2: recompute conv tile, apply folded BN (one mul + add) + ReLU,
    store only the real Cout lanes."""
    acc = _conv_tile(x_ref, w_ref, ky_taps=ky_taps, tile_m=tile_m, w_cols=w_cols)
    y = acc * scale_ref[...] + shift_ref[...]
    o_ref[0, 0, :, :] = jnp.maximum(y[:, :cout], 0.0).astype(o_ref.dtype)


# ---------------------------------------------------------------------------
# wrapper
# ---------------------------------------------------------------------------
def conv_layer_forward(x, weight, bias, gamma, beta, *,
                       compute_dtype=jnp.float32, tile_h=None):
    """x: (N, Cin, H, W); weight: (Cout, Cin, 3, 3) OIHW; bias/gamma/beta: (Cout,)."""
    N, Cin, H, W = x.shape
    Cout = weight.shape[0]
    del bias  # training-mode BN mean-centering cancels the conv bias exactly.

    f32 = jnp.float32
    # Lane-dense MXU output width; round to 256 when Cout > 128 (v6e/v7x MXU width).
    Cpad = LANE if Cout <= LANE else ((Cout + 255) // 256) * 256

    # Tap-packing choice: small Cin -> pack all 9 taps (K = 9*Cin, one matmul, best
    # MXU fill); large Cin -> pack only kx (K = 3*Cin, 3 ky matmuls, HBM expansion
    # capped at 3x).
    pack9 = (9 * Cin) <= 256
    KY = 1 if pack9 else 3
    K = (9 if pack9 else 3) * Cin
    halo = 0 if pack9 else 2                   # extra rows per tile for the ky shifts

    dtype_bytes = jnp.dtype(compute_dtype).itemsize
    vmem_limit = _vmem_limit_bytes()
    if tile_h is None:
        tile_h = _pick_tile_h(H, W, bytes_per_row=W * K * dtype_bytes,
                              halo_rows=halo, budget_bytes=vmem_limit // 8)
    assert H % tile_h == 0, "tile_h must divide H"
    n_ht = H // tile_h
    tile_m = tile_h * W
    rows_per_tile = tile_m + halo * W
    M = N * H * W

    # --- pack input taps into channels (XLA pre-pass; O(K/Cin) x input in HBM) ----
    x_nhwc = jnp.transpose(x, (0, 2, 3, 1)).astype(f32)
    xp = jnp.pad(x_nhwc, ((0, 0), (1, 1), (1, 1), (0, 0)))          # (N, H+2, W+2, Cin)
    if pack9:
        taps = [xp[:, ky:ky + H, kx:kx + W, :] for ky in range(3) for kx in range(3)]
        xpk = jnp.concatenate(taps, axis=-1)                        # (N, H, W, 9*Cin)
    else:
        taps = [xp[:, :, kx:kx + W, :] for kx in range(3)]
        xpk = jnp.concatenate(taps, axis=-1)                        # (N, H+2, W, 3*Cin)
    xpk = xpk.astype(compute_dtype)

    # Per H-tile slabs (with a 2-row halo on the 3-tap path) -> VMEM is O(tile_h).
    if pack9:
        x_tiles = xpk.reshape(N, n_ht, rows_per_tile, K)
    else:
        slabs = [xpk[:, i * tile_h: i * tile_h + tile_h + 2] for i in range(n_ht)]
        x_tiles = jnp.stack(slabs, axis=1).reshape(N, n_ht, rows_per_tile, K)

    # Weights: OIHW -> (ky, kx, Cin, Cout) -> (KY, K, Cout), Cout zero-padded to Cpad.
    w_t = jnp.transpose(weight, (2, 3, 1, 0)).astype(f32)
    w_k = w_t.reshape(KY, K, Cout)
    w_pad = jnp.zeros((KY, K, Cpad), f32).at[:, :, :Cout].set(w_k).astype(compute_dtype)

    # Cheap per-channel shift estimate of the conv mean (variance stabilization).
    x_cmean = jnp.mean(x.astype(f32), axis=(0, 2, 3))               # (Cin,)
    w_sum = jnp.sum(weight.astype(f32), axis=(2, 3))                # (Cout, Cin)
    c_pad = jnp.zeros((1, Cpad), f32).at[0, :Cout].set(w_sum @ x_cmean)

    # --- specs --------------------------------------------------------------------
    grid = (N, n_ht)
    x_spec = pl.BlockSpec((1, 1, rows_per_tile, K), lambda n, i: (n, i, 0, 0))
    w_spec = pl.BlockSpec((KY, K, Cpad), lambda n, i: (0, 0, 0))
    vec_spec = pl.BlockSpec((1, Cpad), lambda n, i: (0, 0))
    stats_spec = pl.BlockSpec((1, 1, Cpad), lambda n, i: (n, 0, 0))

    conv_flops = 2 * M * (9 * Cin) * Cpad
    x_bytes = x_tiles.size * dtype_bytes
    w_bytes = w_pad.size * dtype_bytes

    # --- pass 1: per-batch partial sum / sum-of-squares (megacore over N) ----------
    part_sum, part_sq = pl.pallas_call(
        functools.partial(_stats_kernel, ky_taps=KY, tile_m=tile_m, w_cols=W),
        grid=grid,
        in_specs=[x_spec, w_spec, vec_spec],
        out_specs=(stats_spec, stats_spec),
        out_shape=(jax.ShapeDtypeStruct((N, 1, Cpad), f32),
                   jax.ShapeDtypeStruct((N, 1, Cpad), f32)),
        compiler_params=pltpu.CompilerParams(
            dimension_semantics=("parallel", "arbitrary"),
            vmem_limit_bytes=vmem_limit),
        cost_estimate=pl.CostEstimate(
            flops=conv_flops + 4 * M * Cpad, transcendentals=0,
            bytes_accessed=x_bytes + w_bytes + 2 * N * Cpad * 4),
    )(x_tiles, w_pad, c_pad)

    # --- fold training-mode BN into one per-channel scale/shift (tiny, plain JAX) --
    s1 = jnp.sum(part_sum, axis=0) / M                               # (1, Cpad)
    s2 = jnp.sum(part_sq, axis=0) / M
    mean = c_pad + s1
    var = jnp.maximum(s2 - s1 * s1, 0.0)                             # biased var (BN fwd)
    inv_std = lax.rsqrt(var + EPS)
    gamma_pad = jnp.zeros((1, Cpad), f32).at[0, :Cout].set(gamma.astype(f32))
    beta_pad = jnp.zeros((1, Cpad), f32).at[0, :Cout].set(beta.astype(f32))
    scale = gamma_pad * inv_std
    shift = beta_pad - mean * scale

    # --- pass 2: recompute conv tiles, scale/shift + ReLU, Cout-lane stores --------
    out_spec = pl.BlockSpec((1, 1, tile_m, Cout), lambda n, i: (n, i, 0, 0))
    out = pl.pallas_call(
        functools.partial(_apply_kernel, ky_taps=KY, tile_m=tile_m, w_cols=W, cout=Cout),
        grid=grid,
        in_specs=[x_spec, w_spec, vec_spec, vec_spec],
        out_specs=out_spec,
        out_shape=jax.ShapeDtypeStruct((N, n_ht, tile_m, Cout), f32),
        compiler_params=pltpu.CompilerParams(
            dimension_semantics=("parallel", "parallel"),
            vmem_limit_bytes=vmem_limit),
        cost_estimate=pl.CostEstimate(
            flops=conv_flops + 3 * M * Cpad, transcendentals=0,
            bytes_accessed=x_bytes + w_bytes + M * Cout * 4),
    )(x_tiles, w_pad, scale, shift)

    out = out.reshape(N, H, W, Cout)          # free reshape (contiguous)
    return jnp.transpose(out, (0, 3, 1, 2))   # NHWC -> NCHW (single small XLA pass)


# ---------------------------------------------------------------------------
# reference & test
# ---------------------------------------------------------------------------
def _reference(x, weight, bias, gamma, beta):
    conv = jax.lax.conv_general_dilated(
        x, weight, window_strides=(1, 1), padding="SAME",
        dimension_numbers=("NCHW", "OIHW", "NCHW"),
    ) + bias.reshape(1, -1, 1, 1)
    mean = conv.mean(axis=(0, 2, 3), keepdims=True)
    var = ((conv - mean) ** 2).mean(axis=(0, 2, 3), keepdims=True)
    y = (conv - mean) / jnp.sqrt(var + EPS) * gamma.reshape(1, -1, 1, 1) \
        + beta.reshape(1, -1, 1, 1)
    return jnp.maximum(y, 0.0)


if __name__ == "__main__":
    key = jax.random.PRNGKey(0)
    k_x, k_w, k_b, k_g, k_be = jax.random.split(key, 5)

    N, Cin, H, W = 2, 4, 16, 16
    Cout = 8

    x = jax.random.normal(k_x, (N, Cin, H, W), dtype=jnp.float32)
    weight = 0.1 * jax.random.normal(k_w, (Cout, Cin, 3, 3), dtype=jnp.float32)
    bias = 0.1 * jax.random.normal(k_b, (Cout,), dtype=jnp.float32)
    gamma = 1.0 + 0.1 * jax.random.normal(k_g, (Cout,), dtype=jnp.float32)
    beta = 0.1 * jax.random.normal(k_be, (Cout,), dtype=jnp.float32)

    ref = _reference(x, weight, bias, gamma, beta)

    # 1) default f32 path (9-tap packing, K = 9*Cin), strict tolerance.
    out = jax.block_until_ready(conv_layer_forward(x, weight, bias, gamma, beta))
    assert out.shape == (N, Cout, H, W)
    assert jnp.allclose(out, ref, atol=1e-4, rtol=1e-4), "f32 path mismatch vs reference"

    # 2) bf16 MXU path (f32 accumulation), multi-H-tile grid, looser tolerance.
    out_bf16 = jax.block_until_ready(
        conv_layer_forward(x, weight, bias, gamma, beta,
                           compute_dtype=jnp.bfloat16, tile_h=4))
    assert jnp.allclose(out_bf16, ref, atol=5e-2, rtol=5e-2), "bf16 path mismatch vs reference"

    # 3) large-Cin path: 3-tap (kx) packing + 2-row halo slabs, multi-tile grid.
    k2 = jax.random.split(key, 6)
    N2, Cin2, H2, W2, Cout2 = 2, 32, 8, 8, 16
    x2 = jax.random.normal(k2[0], (N2, Cin2, H2, W2), dtype=jnp.float32)
    w2 = 0.05 * jax.random.normal(k2[1], (Cout2, Cin2, 3, 3), dtype=jnp.float32)
    b2 = 0.1 * jax.random.normal(k2[2], (Cout2,), dtype=jnp.float32)
    g2 = 1.0 + 0.1 * jax.random.normal(k2[3], (Cout2,), dtype=jnp.float32)
    be2 = 0.1 * jax.random.normal(k2[4], (Cout2,), dtype=jnp.float32)
    out2 = jax.block_until_ready(conv_layer_forward(x2, w2, b2, g2, be2, tile_h=4))
    ref2 = _reference(x2, w2, b2, g2, be2)
    assert out2.shape == (N2, Cout2, H2, W2)
    assert jnp.allclose(out2, ref2, atol=1e-4, rtol=1e-4), "halo-tiled path mismatch vs reference"

    print("KERNEL_OK")
</pallas_src>

<mosaic_0001>
module attributes {stable_mosaic.version = 11 : i64} {
  func.func @_stats_kernel(%arg0: i32, %arg1: i32, %arg2: memref<1x1x256x36xf32, #tpu.memory_space<vmem>>, %arg3: memref<1x36x128xf32, #tpu.memory_space<vmem>>, %arg4: memref<1x128xf32, #tpu.memory_space<vmem>>, %arg5: memref<1x1x128xf32, #tpu.memory_space<vmem>>, %arg6: memref<1x1x128xf32, #tpu.memory_space<vmem>>) attributes {dimension_semantics = [#tpu.dimension_semantics<parallel>, #tpu.dimension_semantics<arbitrary>], iteration_bounds = array<i64: 2, 1>, scalar_prefetch = 0 : i64, scratch_operands = 0 : i64, tpu.core_type = #tpu.core_type<tc>, window_params = [{transform_indices = @transform_0, window_bounds = array<i64: 1, 1, 256, 36>}, {pipeline_mode = #tpu.pipeline_mode<synchronous>, transform_indices = @transform_1, window_bounds = array<i64: 1, 36, 128>}, {pipeline_mode = #tpu.pipeline_mode<synchronous>, transform_indices = @transform_2, window_bounds = array<i64: 1, 128>}, {transform_indices = @transform_3, window_bounds = array<i64: 1, 1, 128>}, {transform_indices = @transform_4, window_bounds = array<i64: 1, 1, 128>}]} {
    %c0_i32 = arith.constant 0 : i32
    %0 = arith.cmpi eq, %arg1, %c0_i32 : i32
    %1 = arith.extui %0 : i1 to i32
    %c0_i32_0 = arith.constant 0 : i32
    %2 = arith.cmpi ne, %1, %c0_i32_0 : i32
    scf.if %2 {
      %cst_23 = arith.constant 0.000000e+00 : f32
      %24 = vector.broadcast %cst_23 : f32 to vector<1x1x128xf32>
      %c0_24 = arith.constant 0 : index
      %c0_25 = arith.constant 0 : index
      %c0_26 = arith.constant 0 : index
      %25 = vector.load %arg5[%c0_24, %c0_25, %c0_26] : memref<1x1x128xf32, #tpu.memory_space<vmem>>, vector<1x1x128xf32>
      tpu.vector_store %arg5[%c0_24, %c0_25, %c0_26], %24 {strides = array<i32>} : memref<1x1x128xf32, #tpu.memory_space<vmem>>, vector<1x1x128xf32>,
      %cst_27 = arith.constant 0.000000e+00 : f32
      %26 = vector.broadcast %cst_27 : f32 to vector<1x1x128xf32>
      %c0_28 = arith.constant 0 : index
      %c0_29 = arith.constant 0 : index
      %c0_30 = arith.constant 0 : index
      %27 = vector.load %arg6[%c0_28, %c0_29, %c0_30] : memref<1x1x128xf32, #tpu.memory_space<vmem>>, vector<1x1x128xf32>
      tpu.vector_store %arg6[%c0_28, %c0_29, %c0_30], %26 {strides = array<i32>} : memref<1x1x128xf32, #tpu.memory_space<vmem>>, vector<1x1x128xf32>,
    } else {
    }
    %c0 = arith.constant 0 : index
    %c0_1 = arith.constant 0 : index
    %c0_2 = arith.constant 0 : index
    %c0_3 = arith.constant 0 : index
    %3 = vector.load %arg2[%c0, %c0_1, %c0_2, %c0_3] : memref<1x1x256x36xf32, #tpu.memory_space<vmem>>, vector<1x1x256x36xf32>
    %4 = vector.shape_cast %3 : vector<1x1x256x36xf32> to vector<256x36xf32>
    %c0_4 = arith.constant 0 : index
    %c0_5 = arith.constant 0 : index
    %c0_6 = arith.constant 0 : index
    %5 = vector.load %arg3[%c0_4, %c0_5, %c0_6] : memref<1x36x128xf32, #tpu.memory_space<vmem>>, vector<1x36x128xf32>
    %6 = vector.shape_cast %5 : vector<1x36x128xf32> to vector<36x128xf32>
    %cst = arith.constant dense<0.000000e+00> : vector<256x128xf32>
    %7 = tpu.matmul %4, %6, %cst {dimension_numbers = #tpu.dot_dimension_numbers<[1], [0], [0], [1], [0, 0, 1, 1], [], []>} : vector<256x36xf32>, vector<36x128xf32>, vector<256x128xf32> -> vector<256x128xf32>
    %c0_7 = arith.constant 0 : index
    %c0_8 = arith.constant 0 : index
    %8 = vector.load %arg4[%c0_7, %c0_8] : memref<1x128xf32, #tpu.memory_space<vmem>>, vector<1x128xf32>
    %9 = vector.broadcast %8 : vector<1x128xf32> to vector<256x128xf32>
    %10 = arith.subf %7, %9 : vector<256x128xf32>
    %c0_9 = arith.constant 0 : index
    %c0_10 = arith.constant 0 : index
    %c0_11 = arith.constant 0 : index
    %11 = vector.load %arg5[%c0_9, %c0_10, %c0_11] : memref<1x1x128xf32, #tpu.memory_space<vmem>>, vector<1x1x128xf32>
    %cst_12 = arith.constant dense<0.000000e+00> : vector<128xf32>
    %12 = vector.multi_reduction <add>, %10, %cst_12 [0] : vector<256x128xf32> to vector<128xf32>
    %13 = vector.shape_cast %12 : vector<128xf32> to vector<1x128xf32>
    %14 = vector.shape_cast %13 : vector<1x128xf32> to vector<1x1x128xf32>
    %15 = arith.addf %11, %14 : vector<1x1x128xf32>
    %c0_13 = arith.constant 0 : index
    %c0_14 = arith.constant 0 : index
    %c0_15 = arith.constant 0 : index
    %16 = vector.load %arg5[%c0_13, %c0_14, %c0_15] : memref<1x1x128xf32, #tpu.memory_space<vmem>>, vector<1x1x128xf32>
    tpu.vector_store %arg5[%c0_13, %c0_14, %c0_15], %15 {strides = array<i32>} : memref<1x1x128xf32, #tpu.memory_space<vmem>>, vector<1x1x128xf32>,
    %c0_16 = arith.constant 0 : index
    %c0_17 = arith.constant 0 : index
    %c0_18 = arith.constant 0 : index
    %17 = vector.load %arg6[%c0_16, %c0_17, %c0_18] : memref<1x1x128xf32, #tpu.memory_space<vmem>>, vector<1x1x128xf32>
    %18 = arith.mulf %10, %10 : vector<256x128xf32>
    %cst_19 = arith.constant dense<0.000000e+00> : vector<128xf32>
    %19 = vector.multi_reduction <add>, %18, %cst_19 [0] : vector<256x128xf32> to vector<128xf32>
    %20 = vector.shape_cast %19 : vector<128xf32> to vector<1x128xf32>
    %21 = vector.shape_cast %20 : vector<1x128xf32> to vector<1x1x128xf32>
    %22 = arith.addf %17, %21 : vector<1x1x128xf32>
    %c0_20 = arith.constant 0 : index
    %c0_21 = arith.constant 0 : index
    %c0_22 = arith.constant 0 : index
    %23 = vector.load %arg6[%c0_20, %c0_21, %c0_22] : memref<1x1x128xf32, #tpu.memory_space<vmem>>, vector<1x1x128xf32>
    tpu.vector_store %arg6[%c0_20, %c0_21, %c0_22], %22 {strides = array<i32>} : memref<1x1x128xf32, #tpu.memory_space<vmem>>, vector<1x1x128xf32>,
    return
  }
  func.func @transform_0(%arg0: i32, %arg1: i32) -> (i32, i32, i32, i32) {
    %c0_i32 = arith.constant 0 : i32
    %c0_i32_0 = arith.constant 0 : i32
    %c0_i32_1 = arith.constant 0 : i32
    return %arg0, %arg1, %c0_i32, %c0_i32_0 : i32, i32, i32, i32
  }
  func.func @transform_1(%arg0: i32, %arg1: i32) -> (i32, i32, i32) {
    %c0_i32 = arith.constant 0 : i32
    %c0_i32_0 = arith.constant 0 : i32
    %c0_i32_1 = arith.constant 0 : i32
    %c0_i32_2 = arith.constant 0 : i32
    return %c0_i32, %c0_i32_0, %c0_i32_1 : i32, i32, i32
  }
  func.func @transform_2(%arg0: i32, %arg1: i32) -> (i32, i32) {
    %c0_i32 = arith.constant 0 : i32
    %c0_i32_0 = arith.constant 0 : i32
    %c0_i32_1 = arith.constant 0 : i32
    return %c0_i32, %c0_i32_0 : i32, i32
  }
  func.func @transform_3(%arg0: i32, %arg1: i32) -> (i32, i32, i32) {
    %c0_i32 = arith.constant 0 : i32
    %c0_i32_0 = arith.constant 0 : i32
    %c0_i32_1 = arith.constant 0 : i32
    return %arg0, %c0_i32, %c0_i32_0 : i32, i32, i32
  }
  func.func @transform_4(%arg0: i32, %arg1: i32) -> (i32, i32, i32) {
    %c0_i32 = arith.constant 0 : i32
    %c0_i32_0 = arith.constant 0 : i32
    %c0_i32_1 = arith.constant 0 : i32
    return %arg0, %c0_i32, %c0_i32_0 : i32, i32, i32
  }
}

</mosaic_0001>

<bundles_post_ra>
// kernel: tpu_custom_call.1
= control target key start
LH: loop header
LB: loop body
LE: loop exit
PB: predicated region body
PF: predicated region fallthrough
CT: control target
= control target key end

     0   :  { %10 = vsyncpa [#allocation3], 0  ;;  %s1555_s0 = inlined_call_operand.vmem [shape: f32[2,1,256,36], index: 0, kind: input, shape index: {}]   ;;  %s1556_s1 = inlined_call_operand.vmem [shape: f32[1,36,128], index: 1, kind: input, shape index: {}]   ;;  %s1557_s2 = inlined_call_operand.vmem [shape: f32[1,128], index: 2, kind: input, shape index: {}]   ;;  %s1558_s3 = inlined_call_operand.hbm [shape: f32[2,1,128], index: 3, kind: output, shape index: {0}]   ;;  %s1559_s4 = inlined_call_operand.hbm [shape: f32[2,1,128], index: 4, kind: output, shape index: {1}]  }
   0x1   :  { %12 = vsyncpa [#allocation3 + $0x1], 0 }
   0x2   :  { %13 = vsyncpa [#allocation5], 0 }
   0x3   :  { %15 = vsyncpa [#allocation5 + $0x1], 0  ;;  %s1237_s15 = smov 0   ;;  %s1239_s16 = smov 0  }
   0x4   :  { %s1241_s17 = smov 0   ;;  %s1243_s18 = smov 0  }
   0x5   :  { %s1245_s19 = smov 0   ;;  %s1247_s20 = smov 0  }
   0x6 LB: > { %s881_s21 = sadd.s32 4294967295, %s1207_s20   ;;  %s882_s22 = sadd.s32 4294967294, %s1207_s20   ;;  %s1207_s20 = sphi %s1247_s20, %s21_s20   ;;  %s1203_s19 = sphi %s1245_s19, %s1566_s19   ;;  %s1199_s18 = sphi %s1243_s18, %s1565_s18   ;;  %s1195_s17 = sphi %s1241_s17, %s1564_s17   ;;  %s1191_s16 = sphi %s1239_s16, %s1563_s16   ;;  %s1187_s15 = sphi %s1237_s15, %s1562_s15  }
   0x7   : > { %s33_s23 = sadd.s32 1, %s1203_s19  ;;  %s110_s24 = sadd.s32 1, %s1195_s17 }
   0x8   : > { %p35_p0 = scmp.ge.s32.totalorder %s33_s23, 2  ;;  %p120_p1 = scmp.ne.s32.totalorder %s1195_s17, %s1191_s16 }
   0x9   : > { %p121_p2 = scmp.eq.s32.totalorder %s881_s21, 1  ;;  %p126_p3 = scmp.ne.s32.totalorder %s1191_s16, %s1187_s15 }
   0xa   : > { %s1568_s23 = smov (%p35_p0, %s33_s23), 0  ;;  %p127_p5 = scmp.eq.s32.totalorder %s882_s22, 1 }
   0xb   : > { %p1277_p4 = por %p121_p2, %p120_p1  ;;  %s107_s26 = ssub.s32 %s1203_s19, %s1568_s23 }
   0xc   : > { %p885_p6 = scmp.ge.s32.totalorder %s1207_s20, 1  ;;  %p108_p7 = scmp.eq.s32.totalorder %s107_s26, 0 }
   0xd   : > { %p1284_p8 = por %p127_p5, %p126_p3  ;;  %p189_p9 = scmp.lt.s32.totalorder %s1207_s20, 3 }
   0xe   : > { %s1290_s28 = scalar_select %p108_p7, %s1195_s17, %s110_s24  }
   0xf   : > { %p190_p10 = pnand %p885_p6, %p189_p9 }
  0x10   : > { %v269_v0 = vld [vmem:[%s1556_s1] sm:$0xff] (!%p190_p10)  ;;  %v270_v1 = vld [vmem:[%s1556_s1 + $0x8] sm:$0xff] (!%p190_p10)  ;;  %v271_v2 = vld [vmem:[%s1556_s1 + $0x10] sm:$0xff] (!%p190_p10)  ;;  %p222_p11 = scmp.lt.s32.totalorder (!%p190_p10), %s1199_s18, 1  ;;  %vm274_vm0 = vcmask (!%p190_p10), 293888   ;;  %vm371_vm1 = vcmask (!%p190_p10), 1043456  }
  0x11   : > { %193 = sbr.rel (%p190_p10) target bundleno = 360 (0x168), region = 32  ;;  %v1022_v3 = vpack.c.bf16 (!%p190_p10), %v270_v1, %v269_v0  ;;  %v272_v4 = vld [vmem:[%s1556_s1 + $0x18] sm:$0xff] (!%p190_p10)  ;;  %v273_v6 = vld [vmem:[%s1556_s1 + $0x20] sm:$0xf] (!%p190_p10)  ;;  %s1379_s26 = sand.u32 (!%p190_p10), 1, %s1191_s16   ;;  %v1209_v39 = vmov (!%p190_p10), 0.0  }
  0x12   : > { %v1026_v5 = vpack.c.bf16 (!%p190_p10), %v272_v4, %v271_v2  ;;  %s1382_s29 = scalar_lea.vmem (!%p190_p10), [#allocation2], %s1379_s26  ;;  %s1386_s30 = scalar_lea.vmem (!%p190_p10), [#allocation4], %s1379_s26  ;;  %v1392_v40 = vld [vmem:[%s1557_s2] ss:$0 sm:$0xff] (!%p190_p10) }
  0x13   : > { %1023 = vmatprep.subr.bf16.mxu0 (!%p190_p10), %v1022_v3  ;;  %1030 = vmatprep.subr.bf16.mxu1 (!%p190_p10), %v1022_v3  ;;  %235 = vst [vmem:[%s1382_s29] sm:$0x1] (!%p190_p10), %v1209_v39  ;;  %236 = vst [vmem:[%s1386_s30] sm:$0x1] (!%p190_p10), %v1209_v39  ;;  %s922_s7 = sshll.u32 (!%p190_p10), %s1199_s18, 4  ;;  %s768_s8 = sshll.u32 (!%p190_p10), %s1382_s29, 4  ;;  %s1478_s8 = int_to_ptr.vmem [resolvable:$true] %s768_s8 }
  0x14   : > { %1025 = vmatpush3.bf16.msra.mxu0 (!%p190_p10), %v1022_v3  ;;  %1033 = vmatpush3.bf16.msra.mxu1 (!%p190_p10), %v1022_v3  ;;  %s781_s9 = sshll.u32 (!%p190_p10), %s1386_s30, 4  ;;  %s1484_s14 = scalar_lea.hbm (!%p190_p10), %s1559_s4, %s922_s7  ;;  %s1486_s9 = int_to_ptr.vmem [resolvable:$true] %s781_s9 }
  0x15   : > { %1027 = vmatprep.subr.bf16.mxu0 (!%p190_p10), %v1026_v5  ;;  %1031 = vmatprep.subr.bf16.mxu1 (!%p190_p10), %v1026_v5  ;;  %s1097_s22 = scalar_lea.vmem (!%p190_p10), %s1478_s8, 16  ;;  %s1210_s24 = smov (!%p190_p10), [#allocation2]  }
  0x16   : > { %p1098_p12 = scmp.ne.s32.totalorder (!%p190_p10), %s1478_s8, %s1097_s22  ;;  %s1101_s5 = sshll.u32 (!%p190_p10), %s1210_s24, 4  ;;  %s1102_s5 = int_to_ptr.vmem [resolvable:$false] %s1101_s5 }
  0x17   : > { %s1103_s6 = scalar_lea.vmem (!%p190_p10), %s1102_s5, 32  ;;  %p1104_p1 = scmp.lt.s32.totalorder (!%p190_p10), %s1478_s8, %s1102_s5 }
  0x18   : > { %s223_s11 = scalar_select %p222_p11, %s1199_s18, 1  ;;  %1029 = vmatpush3.bf16.msra.mxu0 %v1026_v5  ;;  %1034 = vmatpush3.bf16.msra.mxu1 %v1026_v5 }
  0x19   : > { %972 = vmatprep.subr.msk.mxu0 %vm371_vm1, %v273_v6  ;;  %1032 = vmatprep.subr.msk.mxu1 %vm371_vm1, %v273_v6  ;;  %p1099_p13 = pnand %p1098_p12, %p1277_p4  ;;  %p1105_p2 = scmp.lt.s32.totalorder %s1103_s6, %s1097_s22 }
  0x1a   : > { %s926_s12 = sshll.u32 %s223_s11, 8 }
  0x1b   : > { %s1309_s21 = scalar_lea.vmem %s1555_s0, %s926_s12  ;;  %s1476_s12 = scalar_lea.hbm %s1558_s3, %s922_s7 }
  0x1c   : > { %v237_v7 = vld [vmem:[%s1309_s21] sm:$0xff]  ;;  %v238_v8 = vld [vmem:[%s1309_s21 + $0x8] sm:$0xff]  ;;  %v239_v9 = vld [vmem:[%s1309_s21 + $0x10] sm:$0xff]  ;;  %973 = vmatpush3.msk.msra.mxu0 %vm371_vm1, %v273_v6  ;;  %1035 = vmatpush3.msk.msra.mxu1 %vm371_vm1, %v273_v6  ;;  %p1100_p0 = pneg %p1099_p13  ;;  %p1106_p3 = por %p1105_p2, %p1104_p1 }
  0x1d   : > { %974 = vmatprep.mubr.msk.f32.mxu0 %vm274_vm0, %v237_v7  ;;  %v253_v10 = vld [vmem:[%s1309_s21 + $0x80] sm:$0xff]  ;;  %v254_v11 = vld [vmem:[%s1309_s21 + $0x88] sm:$0xff]  ;;  %v255_v12 = vld [vmem:[%s1309_s21 + $0x90] sm:$0xff] }
  0x1e   : > { %975 = vmatmul.mubr.msk.f32.vlgmr.msra.gmra.mrb[0].mxu0 %vm274_vm0, %v238_v8  ;;  %998 = vmatprep.mubr.msk.f32.mxu1 %vm274_vm0, %v253_v10  ;;  %v240_v13 = vld [vmem:[%s1309_s21 + $0x18] sm:$0xff]  ;;  %v241_v14 = vld [vmem:[%s1309_s21 + $0x20] sm:$0xff]  ;;  %v242_v17 = vld [vmem:[%s1309_s21 + $0x28] sm:$0xff]  ;;  %p1107_p5 = pnand %p1106_p3, %p1100_p0 }
  0x1f   : > { %977 = vmatprep.mubr.msk.f32.mxu0 %vm274_vm0, %v239_v9  ;;  %999 = vmatmul.mubr.msk.f32.vlgmr.msra.gmra.mrb[0].mxu1 %vm274_vm0, %v254_v11  ;;  %v256_v15 = vld [vmem:[%s1309_s21 + $0x98] sm:$0xff]  ;;  %v257_v16 = vld [vmem:[%s1309_s21 + $0xa0] sm:$0xff]  ;;  %v243_v18 = vld [vmem:[%s1309_s21 + $0x30] sm:$0xff] }
  0x20   : > { %1001 = vmatprep.mubr.msk.f32.mxu1 %vm274_vm0, %v255_v12  ;;  %v258_v19 = vld [vmem:[%s1309_s21 + $0xa8] sm:$0xff]  ;;  %v259_v20 = vld [vmem:[%s1309_s21 + $0xb0] sm:$0xff]  ;;  %v244_v21 = vld [vmem:[%s1309_s21 + $0x38] sm:$0xff] }
  0x21   : > { %v245_v22 = vld [vmem:[%s1309_s21 + $0x40] sm:$0xff]  ;;  %v260_v23 = vld [vmem:[%s1309_s21 + $0xb8] sm:$0xff]  ;;  %v246_v25 = vld [vmem:[%s1309_s21 + $0x48] sm:$0xff] }
  0x22   : > { %978 = vmatmul.mubr.msk.f32.gmra.mrb[2].mxu0 %vm274_vm0, %v240_v13  ;;  %v261_v24 = vld [vmem:[%s1309_s21 + $0xc0] sm:$0xff]  ;;  %v247_v26 = vld [vmem:[%s1309_s21 + $0x50] sm:$0xff]  ;;  %v262_v27 = vld [vmem:[%s1309_s21 + $0xc8] sm:$0xff] }
  0x23   : > { %980 = vmatprep.mubr.msk.f32.mxu0 %vm274_vm0, %v241_v14  ;;  %1002 = vmatmul.mubr.msk.f32.gmra.mrb[2].mxu1 %vm274_vm0, %v256_v15  ;;  %v263_v28 = vld [vmem:[%s1309_s21 + $0xd0] sm:$0xff]  ;;  %v248_v29 = vld [vmem:[%s1309_s21 + $0x58] sm:$0xff]  ;;  %v249_v30 = vld [vmem:[%s1309_s21 + $0x60] sm:$0xff] }
  0x24   : > { %1004 = vmatprep.mubr.msk.f32.mxu1 %vm274_vm0, %v257_v16  ;;  %v264_v31 = vld [vmem:[%s1309_s21 + $0xd8] sm:$0xff]  ;;  %v265_v32 = vld [vmem:[%s1309_s21 + $0xe0] sm:$0xff]  ;;  %v250_v33 = vld [vmem:[%s1309_s21 + $0x68] sm:$0xff] }
  0x25   : > { %v251_v34 = vld [vmem:[%s1309_s21 + $0x70] sm:$0xff]  ;;  %v266_v35 = vld [vmem:[%s1309_s21 + $0xe8] sm:$0xff]  ;;  %v252_v37 = vld [vmem:[%s1309_s21 + $0x78] sm:$0xff] }
  0x26   : > { %981 = vmatmul.mubr.msk.f32.gmra.mrb[4].mxu0 %vm274_vm0, %v242_v17  ;;  %v267_v36 = vld [vmem:[%s1309_s21 + $0xf0] sm:$0xff]  ;;  %v268_v38 = vld [vmem:[%s1309_s21 + $0xf8] sm:$0xff]  ;;  %s752_s21 = scalar_lea.sflag [#allocation3], %s1379_s26 }
  0x27   : > { %983 = vmatprep.mubr.msk.f32.mxu0 %vm274_vm0, %v243_v18  ;;  %1005 = vmatmul.mubr.msk.f32.gmra.mrb[4].mxu1 %vm274_vm0, %v258_v19 }
  0x28   : > { %1007 = vmatprep.mubr.msk.f32.mxu1 %vm274_vm0, %v259_v20 }
  0x2a   : > { %984 = vmatmul.mubr.msk.f32.gmra.mrb[6].mxu0 %vm274_vm0, %v244_v21 }
  0x2b   : > { %986 = vmatprep.mubr.msk.f32.mxu0 %vm274_vm0, %v245_v22  ;;  %1008 = vmatmul.mubr.msk.f32.gmra.mrb[6].mxu1 %vm274_vm0, %v260_v23 }
  0x2c   : > { %1010 = vmatprep.mubr.msk.f32.mxu1 %vm274_vm0, %v261_v24 }
  0x2e   : > { %987 = vmatmul.mubr.msk.f32.gmra.mrb[8].mxu0 %vm274_vm0, %v246_v25 }
  0x2f   : > { %989 = vmatprep.mubr.msk.f32.mxu0 %vm274_vm0, %v247_v26  ;;  %1011 = vmatmul.mubr.msk.f32.gmra.mrb[8].mxu1 %vm274_vm0, %v262_v27 }
  0x30   : > { %1013 = vmatprep.mubr.msk.f32.mxu1 %vm274_vm0, %v263_v28 }
  0x32   : > { %990 = vmatmul.mubr.msk.f32.gmra.mrb[10].mxu0 %vm274_vm0, %v248_v29 }
  0x33   : > { %992 = vmatprep.mubr.msk.f32.mxu0 %vm274_vm0, %v249_v30  ;;  %1014 = vmatmul.mubr.msk.f32.gmra.mrb[10].mxu1 %vm274_vm0, %v264_v31 }
  0x34   : > { %1016 = vmatprep.mubr.msk.f32.mxu1 %vm274_vm0, %v265_v32 }
  0x36   : > { %993 = vmatmul.mubr.msk.f32.gmra.mrb[12].mxu0 %vm274_vm0, %v250_v33 }
  0x37   : > { %995 = vmatprep.mubr.msk.f32.mxu0 %vm274_vm0, %v251_v34  ;;  %1017 = vmatmul.mubr.msk.f32.gmra.mrb[12].mxu1 %vm274_vm0, %v266_v35 }
  0x38   : > { %1019 = vmatprep.mubr.msk.f32.mxu1 %vm274_vm0, %v267_v36 }
  0x3a   : > { %996 = vmatmul.mubr.msk.f32.gmra.mrb[14].mxu0 %vm274_vm0, %v252_v37 }
  0x3b   : > { %1020 = vmatmul.mubr.msk.f32.gmra.mrb[14].mxu1 %vm274_vm0, %v268_v38 }
  0xf1   : > { %v976_v41 = vpop.f32.mrb[0].mxu0 }
  0xf2   : > { %v608_v42 = vsub.f32 %v976_v41, %v1392_v40  ;;  %v441_v43 = vpop.f32.mrb[1].mxu0  ;;  %v1395_v44 = vpop.f32.mrb[0].mxu1 }
  0xf3   : > { %v607_v45 = vsub.f32 %v441_v43, %v1392_v40  ;;  %v1398_v46 = vpop.f32.mrb[1].mxu1 }
  0xf4   : > { %v681_v47 = vmul.f32 %v608_v42, %v608_v42 }
  0xf5   : > { %v640_v48 = vadd.f32 %v608_v42, %v607_v45  ;;  %v680_v49 = vmul.f32 %v607_v45, %v607_v45  ;;  %v979_v50 = vpop.f32.mrb[2].mxu0 }
  0xf6   : > { %v451_v51 = vpop.f32.mrb[3].mxu0  ;;  %v1400_v52 = vpop.f32.mrb[2].mxu1  ;;  %v610_v54 = vsub.f32 %v979_v50, %v1392_v40 }
  0xf7   : > { %v712_v53 = vadd.f32 %v681_v47, %v680_v49  ;;  %v609_v55 = vsub.f32 %v451_v51, %v1392_v40  ;;  %v1404_v56 = vpop.f32.mrb[3].mxu1 }
  0xf8   : > { %v683_v63 = vmul.f32 %v610_v54, %v610_v54 }
  0xf9   : > { %v641_v57 = vadd.f32 %v640_v48, %v609_v55  ;;  %v682_v58 = vmul.f32 %v609_v55, %v609_v55  ;;  %v982_v59 = vpop.f32.mrb[4].mxu0 }
  0xfa   : > { %v612_v60 = vsub.f32 %v982_v59, %v1392_v40  ;;  %v461_v61 = vpop.f32.mrb[5].mxu0  ;;  %v1407_v62 = vpop.f32.mrb[4].mxu1 }
  0xfb   : > { %v713_v0 = vadd.f32 %v712_v53, %v682_v58  ;;  %v611_v1 = vsub.f32 %v461_v61, %v1392_v40  ;;  %v642_v2 = vadd.f32 %v641_v57, %v610_v54  ;;  %v1410_v3 = vpop.f32.mrb[5].mxu1 }
  0xfc   : > { %v685_v8 = vmul.f32 %v612_v60, %v612_v60 }
  0xfd   : > { %v643_v4 = vadd.f32 %v642_v2, %v611_v1  ;;  %v684_v5 = vmul.f32 %v611_v1, %v611_v1  ;;  %v714_v6 = vadd.f32 %v713_v0, %v683_v63  ;;  %v985_v7 = vpop.f32.mrb[6].mxu0  ;;  %v623_v0 = vsub.f32 %v1398_v46, %v1392_v40 }
  0xfe   : > { %v471_v9 = vpop.f32.mrb[7].mxu0  ;;  %v1412_v10 = vpop.f32.mrb[6].mxu1  ;;  %v614_v12 = vsub.f32 %v985_v7, %v1392_v40  ;;  %v625_v46 = vsub.f32 %v1404_v56, %v1392_v40 }
  0xff   : > { %v715_v11 = vadd.f32 %v714_v6, %v684_v5  ;;  %v613_v13 = vsub.f32 %v471_v9, %v1392_v40  ;;  %v644_v14 = vadd.f32 %v643_v4, %v612_v60  ;;  %v1416_v15 = vpop.f32.mrb[7].mxu1 }
 0x100   : > { %v687_v23 = vmul.f32 %v614_v12, %v614_v12 }
 0x101   : > { %v645_v16 = vadd.f32 %v644_v14, %v613_v13  ;;  %v686_v17 = vmul.f32 %v613_v13, %v613_v13  ;;  %v716_v18 = vadd.f32 %v715_v11, %v685_v8  ;;  %v988_v19 = vpop.f32.mrb[8].mxu0  ;;  %v696_v13 = vmul.f32 %v623_v0, %v623_v0 }
 0x102   : > { %v616_v20 = vsub.f32 %v988_v19, %v1392_v40  ;;  %v481_v21 = vpop.f32.mrb[9].mxu0  ;;  %v1419_v22 = vpop.f32.mrb[8].mxu1 }
 0x103   : > { %v717_v24 = vadd.f32 %v716_v18, %v686_v17  ;;  %v615_v25 = vsub.f32 %v481_v21, %v1392_v40  ;;  %v646_v26 = vadd.f32 %v645_v16, %v614_v12  ;;  %v1422_v27 = vpop.f32.mrb[9].mxu1  ;;  %v624_v12 = vsub.f32 %v1395_v44, %v1392_v40 }
 0x104   : > { %v689_v32 = vmul.f32 %v616_v20, %v616_v20  ;;  %v626_v21 = vsub.f32 %v1400_v52, %v1392_v40 }
 0x105   : > { %v647_v28 = vadd.f32 %v646_v26, %v615_v25  ;;  %v688_v29 = vmul.f32 %v615_v25, %v615_v25  ;;  %v718_v30 = vadd.f32 %v717_v24, %v687_v23  ;;  %v991_v31 = vpop.f32.mrb[10].mxu0  ;;  %v698_v25 = vmul.f32 %v625_v46, %v625_v46 }
 0x106   : > { %v491_v33 = vpop.f32.mrb[11].mxu0  ;;  %v1424_v34 = vpop.f32.mrb[10].mxu1  ;;  %v618_v36 = vsub.f32 %v991_v31, %v1392_v40  ;;  %v627_v26 = vsub.f32 %v1410_v3, %v1392_v40 }
 0x107   : > { %v719_v35 = vadd.f32 %v718_v30, %v688_v29  ;;  %v617_v37 = vsub.f32 %v491_v33, %v1392_v40  ;;  %v648_v38 = vadd.f32 %v647_v28, %v616_v20  ;;  %v1428_v39 = vpop.f32.mrb[11].mxu1  ;;  %v697_v20 = vmul.f32 %v624_v12, %v624_v12 }
 0x108   : > { %v691_v50 = vmul.f32 %v618_v36, %v618_v36  ;;  %v699_v29 = vmul.f32 %v626_v21, %v626_v21  ;;  %v628_v30 = vsub.f32 %v1407_v62, %v1392_v40  ;;  %v629_v33 = vsub.f32 %v1416_v15, %v1392_v40 }
 0x109   : > { %v649_v41 = vadd.f32 %v648_v38, %v617_v37  ;;  %v690_v42 = vmul.f32 %v617_v37, %v617_v37  ;;  %v720_v43 = vadd.f32 %v719_v35, %v689_v32  ;;  %v994_v45 = vpop.f32.mrb[12].mxu0  ;;  %v700_v32 = vmul.f32 %v627_v26, %v627_v26 }
 0x10a   : > { %v620_v47 = vsub.f32 %v994_v45, %v1392_v40  ;;  %v501_v48 = vpop.f32.mrb[13].mxu0  ;;  %v1431_v49 = vpop.f32.mrb[12].mxu1  ;;  %v630_v37 = vsub.f32 %v1412_v10, %v1392_v40 }
 0x10b   : > { %v721_v51 = vadd.f32 %v720_v43, %v690_v42  ;;  %v619_v53 = vsub.f32 %v501_v48, %v1392_v40  ;;  %v650_v54 = vadd.f32 %v649_v41, %v618_v36  ;;  %v581_v55 = vpop.f32.mrb[13].mxu1  ;;  %v701_v36 = vmul.f32 %v628_v30, %v628_v30 }
 0x10c   : > { %v693_v61 = vmul.f32 %v620_v47, %v620_v47  ;;  %v702_v41 = vmul.f32 %v629_v33, %v629_v33  ;;  %v631_v42 = vsub.f32 %v1422_v27, %v1392_v40  ;;  %v703_v45 = vmul.f32 %v630_v37, %v630_v37 }
 0x10d   : > { %v651_v57 = vadd.f32 %v650_v54, %v619_v53  ;;  %v692_v58 = vmul.f32 %v619_v53, %v619_v53  ;;  %v722_v59 = vadd.f32 %v721_v51, %v691_v50  ;;  %v997_v60 = vpop.f32.mrb[14].mxu0  ;;  %v633_v51 = vsub.f32 %v1428_v39, %v1392_v40 }
 0x10e   : > { %v511_v63 = vpop.f32.mrb[15].mxu0  ;;  %v1436_v1 = vpop.f32.mrb[14].mxu1  ;;  %v622_v4 = vsub.f32 %v997_v60, %v1392_v40  ;;  %v704_v50 = vmul.f32 %v631_v42, %v631_v42  ;;  %v635_v60 = vsub.f32 %v581_v55, %v1392_v40 }
 0x10f   : > { %v723_v2 = vadd.f32 %v722_v59, %v692_v58  ;;  %v621_v5 = vsub.f32 %v511_v63, %v1392_v40  ;;  %v652_v6 = vadd.f32 %v651_v57, %v620_v47  ;;  %v591_v7 = vpop.f32.mrb[15].mxu1  ;;  %v632_v47 = vsub.f32 %v1419_v22, %v1392_v40 }
 0x110   : > { %v695_v14 = vmul.f32 %v622_v4, %v622_v4  ;;  %v634_v57 = vsub.f32 %v1424_v34, %v1392_v40  ;;  %v706_v59 = vmul.f32 %v633_v51, %v633_v51  ;;  %v708_v39 = vmul.f32 %v635_v60, %v635_v60 }
 0x111   : > { %v653_v8 = vadd.f32 %v652_v6, %v621_v5  ;;  %v694_v9 = vmul.f32 %v621_v5, %v621_v5  ;;  %v724_v11 = vadd.f32 %v723_v2, %v693_v61  ;;  %v705_v54 = vmul.f32 %v632_v47, %v632_v47 }
 0x112   : > { %v707_v22 = vmul.f32 %v634_v57, %v634_v57  ;;  %v637_v5 = vsub.f32 %v591_v7, %v1392_v40 }
 0x113   : > { %v725_v16 = vadd.f32 %v724_v11, %v694_v9  ;;  %v654_v17 = vadd.f32 %v653_v8, %v622_v4  ;;  %v638_v11 = vsub.f32 %v1436_v1, %v1392_v40 }
 0x114   : > { %v710_v55 = vmul.f32 %v637_v5, %v637_v5 }
 0x115   : > { %v655_v18 = vadd.f32 %v654_v17, %v623_v0  ;;  %v726_v19 = vadd.f32 %v725_v16, %v695_v14  ;;  %v636_v0 = vsub.f32 %v1431_v49, %v1392_v40  ;;  %v711_v49 = vmul.f32 %v638_v11, %v638_v11 }
 0x117   : > { %v727_v23 = vadd.f32 %v726_v19, %v696_v13  ;;  %v656_v24 = vadd.f32 %v655_v18, %v624_v12  ;;  %v709_v9 = vmul.f32 %v636_v0, %v636_v0 }
 0x119   : > { %v657_v44 = vadd.f32 %v656_v24, %v625_v46  ;;  %v728_v28 = vadd.f32 %v727_v23, %v697_v20 }
 0x11b   : > { %v729_v31 = vadd.f32 %v728_v28, %v698_v25  ;;  %v658_v56 = vadd.f32 %v657_v44, %v626_v21  ;;  %v639_v25 = vld [vmem:[%s1382_s29] sm:$0x1] }
 0x11c   : > { %v679_v28 = vld [vmem:[%s1386_s30] sm:$0x1] }
 0x11d   : > { %v659_v35 = vadd.f32 %v658_v56, %v627_v26  ;;  %v730_v52 = vadd.f32 %v729_v31, %v699_v29 }
 0x11f   : > { %v731_v38 = vadd.f32 %v730_v52, %v700_v32  ;;  %v660_v3 = vadd.f32 %v659_v35, %v628_v30 }
 0x121   : > { %v661_v43 = vadd.f32 %v660_v3, %v629_v33  ;;  %v732_v62 = vadd.f32 %v731_v38, %v701_v36 }
 0x123   : > { %v733_v48 = vadd.f32 %v732_v62, %v702_v41  ;;  %v662_v15 = vadd.f32 %v661_v43, %v630_v37 }
 0x125   : > { %v663_v53 = vadd.f32 %v662_v15, %v631_v42  ;;  %v734_v10 = vadd.f32 %v733_v48, %v703_v45 }
 0x127   : > { %v735_v58 = vadd.f32 %v734_v10, %v704_v50  ;;  %v664_v27 = vadd.f32 %v663_v53, %v632_v47 }
 0x129   : > { %v665_v61 = vadd.f32 %v664_v27, %v633_v51  ;;  %v736_v63 = vadd.f32 %v735_v58, %v705_v54 }
 0x12b   : > { %v737_v2 = vadd.f32 %v736_v63, %v706_v59  ;;  %v666_v4 = vadd.f32 %v665_v61, %v634_v57 }
 0x12d   : > { %v667_v6 = vadd.f32 %v666_v4, %v635_v60  ;;  %v738_v8 = vadd.f32 %v737_v2, %v707_v22 }
 0x12f   : > { %v739_v34 = vadd.f32 %v738_v8, %v708_v39  ;;  %v668_v12 = vadd.f32 %v667_v6, %v636_v0 }
 0x131   : > { %v669_v13 = vadd.f32 %v668_v12, %v637_v5  ;;  %v740_v14 = vadd.f32 %v739_v34, %v709_v9 }
 0x133   : > { %v670_v16 = vadd.f32 %v669_v13, %v638_v11  ;;  %v741_v17 = vadd.f32 %v740_v14, %v710_v55 }
 0x135   : > { %v671_v46 = vrot.slane %v670_v16, 4  ;;  %v742_v7 = vadd.f32 %v741_v17, %v711_v49 }
 0x137   : > { %v672_v18 = vadd.f32 %v671_v46, %v670_v16  ;;  %v743_v19 = vrot.slane %v742_v7, 4 }
 0x139   : > { %v673_v20 = vrot.slane %v672_v18, 2  ;;  %v744_v21 = vadd.f32 %v743_v19, %v742_v7 }
 0x13b   : > { %v674_v40 = vadd.f32 %v673_v20, %v672_v18  ;;  %v745_v1 = vrot.slane %v744_v21, 2 }
 0x13d   : > { %v675_v23 = vrot.slane %v674_v40, 1  ;;  %v746_v24 = vadd.f32 %v745_v1, %v744_v21 }
 0x13f   : > { %v676_v26 = vadd.f32 %v675_v23, %v674_v40  ;;  %v747_v44 = vrot.slane %v746_v24, 1 }
 0x141   : > { %v677_v29 = vadd.f32 %v676_v26, %v639_v25  ;;  %v748_v30 = vadd.f32 %v747_v44, %v746_v24 }
 0x143   : > { %678 = vst [vmem:[%s1382_s29] sm:$0x1] %v677_v29  ;;  %v749_v31 = vadd.f32 %v748_v30, %v679_v28 }
 0x144   : > { %1110 = shalt.err (!%p1107_p5)
}
 0x145   : > { %s1111_s29 = scalar_lea.hbm %s1476_s12, 16  ;;  %s1115_s11 = scalar_lea.hbm %s1558_s3, 32 }
 0x146   : > { %p1112_p6 = scmp.ne.s32.totalorder %s1476_s12, %s1111_s29  ;;  %p1116_p10 = scmp.lt.u32.totalorder %s1476_s12, %s1558_s3 }
 0x147   : > { %p1117_p11 = scmp.lt.u32.totalorder %s1115_s11, %s1111_s29  ;;  %p1119_p13 = scmp.lt.u32.totalorder %s1111_s29, %s1476_s12 }
 0x148   : > { %p1113_p7 = pnand %p1112_p6, %p1277_p4 }
 0x149   : > { %p1118_p12 = por %p1117_p11, %p1116_p10 }
 0x14a   : > { %p1114_p9 = pneg %p1113_p7 }
 0x14b   : > { %p1120_p0 = por %p1119_p13, %p1118_p12 }
 0x14d   : > { %p1121_p1 = pnand %p1120_p0, %p1114_p9 }
 0x14f   : > { %1124 = shalt.err (!%p1121_p1)
}
 0x150   : > { %1036 = dma.vmem_to_hbm [thread:$0]  (%p1277_p4), %s1478_s8, 16, %s1476_s12, %s752_s21   ;;  %750 = vst [vmem:[%s1386_s30] sm:$0x1] %v749_v31 }
 0x151   : > { %s756_s22 = scalar_lea.sflag [#allocation5], %s1379_s26  ;;  %s1125_s24 = scalar_lea.vmem %s1486_s9, 16 }
 0x152   : > { %p1126_p2 = scmp.ne.s32.totalorder %s1486_s9, %s1125_s24  ;;  %s1211_s5 = smov [#allocation4]  }
 0x153   : > { %s1129_s6 = sshll.u32 %s1211_s5, 4  ;;  %s1130_s6 = int_to_ptr.vmem [resolvable:$false] %s1129_s6 }
 0x154   : > { %p1127_p3 = pnand %p1126_p2, %p1277_p4  ;;  %s1131_s29 = scalar_lea.vmem %s1130_s6, 32 }
 0x155   : > { %p1132_p6 = scmp.lt.s32.totalorder %s1486_s9, %s1130_s6  ;;  %p1133_p7 = scmp.lt.s32.totalorder %s1131_s29, %s1125_s24 }
 0x156   : > { %p1128_p5 = pneg %p1127_p3 }
 0x157   : > { %p1134_p9 = por %p1133_p7, %p1132_p6 }
 0x159   : > { %p1135_p10 = pnand %p1134_p9, %p1128_p5 }
 0x15b   : > { %1138 = shalt.err (!%p1135_p10)
}
 0x15c   : > { %s1139_s26 = scalar_lea.hbm %s1484_s14, 16  ;;  %s1143_s12 = scalar_lea.hbm %s1559_s4, 32 }
 0x15d   : > { %p1140_p11 = scmp.ne.s32.totalorder %s1484_s14, %s1139_s26  ;;  %p1144_p0 = scmp.lt.u32.totalorder %s1484_s14, %s1559_s4 }
 0x15e   : > { %p1145_p1 = scmp.lt.u32.totalorder %s1143_s12, %s1139_s26  ;;  %p1147_p3 = scmp.lt.u32.totalorder %s1139_s26, %s1484_s14 }
 0x15f   : > { %p1141_p12 = pnand %p1140_p11, %p1277_p4 }
 0x160   : > { %p1146_p2 = por %p1145_p1, %p1144_p0 }
 0x161   : > { %p1142_p13 = pneg %p1141_p12 }
 0x162   : > { %p1148_p5 = por %p1147_p3, %p1146_p2 }
 0x164   : > { %p1149_p6 = pnand %p1148_p5, %p1142_p13 }
 0x166   : > { %1152 = shalt.err (!%p1149_p6)
}
 0x167   : > { %1037 = dma.vmem_to_hbm [thread:$0]  (%p1277_p4), %s1486_s9, 16, %s1484_s14, %s756_s22  }
 0x168 PF: > { %p1047_p7 = scmp.ge.s32.totalorder %s1207_s20, 2  ;;  %s793_s10 = sand.u32 1, %s1187_s15  }
 0x169   : > { %s794_s11 = scalar_lea.sflag [#allocation3], %s793_s10 }
 0x16a   : > { %p1041_p9 = pnand %p1047_p7, %p1284_p8 }
 0x16c   : > { %1178 = dma.done.wait (!%p1041_p9), %s794_s11, 16  }
 0x16d   : > { %1180 = vsyncadd (!%p1041_p9), %s794_s11, 4294967280  ;;  %s802_s18 = scalar_lea.sflag [#allocation5], %s793_s10 }
 0x16e   : > { %1182 = dma.done.wait (!%p1041_p9), %s802_s18, 16  }
 0x16f   : > { %1184 = vsyncadd (!%p1041_p9), %s802_s18, 4294967280  ;;  %s21_s20 = sadd.s32 1, %s1207_s20   ;;  %s1562_s15 = smov %s1191_s16 }
 0x170   : > { %p18_p10 = scmp.ge.s32.totalorder %s21_s20, 4   ;;  %s1563_s16 = smov %s1195_s17 }
 0x171   : > { %s1564_s17 = smov %s1290_s28  ;;  %s1565_s18 = smov %s1203_s19 }
 0x172   : > { %s1566_s19 = smov %s1568_s23  ;;  %20 = sbr.rel (!%p18_p10) target bundleno = 6 (0x6), region = 88 }
 0x179   :  { %806 = vsyncpa [#allocation3], 1 }
 0x17a   :  { %808 = vsyncpa [#allocation3 + $0x1], 1 }
 0x17b   :  { %809 = vsyncpa [#allocation5], 1 }
 0x17c   :  { %811 = vsyncpa [#allocation5 + $0x1], 1 }

</bundles_post_ra>
